<compile_context>
chip_gen: v7x
topology: tpu7x:2x2x1
jax: 0.10.0
libtpu: 0.0.40
codegen_flags: <defaults>
</compile_context>

<pallas_src>
import functools

import jax
import jax.numpy as jnp
from jax.experimental import pallas as pl
from jax.experimental.pallas import tpu as pltpu


def _transition_kernel(x_ref, scale_ref, bias_ref, w_ref, o_ref, *, tm, wo, c2, c_out):
    # x_ref:     (TM, 2, Wo, 2*C_in)  two H rows per output row; W pair packed in lanes
    # scale_ref: (1, 2*C_in) f32      folded BN scale (gamma * rsqrt(var+eps)), duplicated
    # bias_ref:  (1, 2*C_in) f32      folded BN bias  (beta - mean*scale), duplicated
    # w_ref:     (2*C_in, C_out)      [wk; wk] * 0.25  (W-pair pool + pool scale folded in)
    # o_ref:     (TM, Wo, C_out)      activation dtype
    s = scale_ref[...]
    b = bias_ref[...]
    # Slice the H pair before the affine: keeps the largest f32 temp at (TM, Wo, 2C).
    x0 = x_ref[:, 0].astype(jnp.float32)
    x1 = x_ref[:, 1].astype(jnp.float32)
    yh = jnp.maximum(x0 * s + b, 0.0) + jnp.maximum(x1 * s + b, 0.0)  # BN + ReLU, H-pool
    # 1x1 conv + W-pair pool + avg scale in one 2-D MXU matmul over the 2*C_in lanes.
    lhs = yh.reshape(tm * wo, c2).astype(w_ref.dtype)
    z = jnp.dot(lhs, w_ref[...], preferred_element_type=jnp.float32)
    o_ref[...] = z.reshape(tm, wo, c_out).astype(o_ref.dtype)


def _pick_tile(m, bytes_per_row, *, budget=4 << 20, min_steps=8):
    """Largest divisor of m whose full per-step working set fits `budget`, with
    the grid kept at >= min_steps steps (>= ~4 per v7x TensorCore) and an even
    step count preferred so the megacore halves balance."""
    cap = max(1, min(m, budget // max(bytes_per_row, 1)))
    if m >= min_steps:
        cap = min(cap, m // min_steps)
    cap = max(cap, 1)
    best, best_even = 1, 0
    for t in range(1, cap + 1):
        if m % t == 0:
            best = t
            if (m // t) % 2 == 0:
                best_even = t
    return best_even if best_even else best


def transition_layer(x_nchw, gamma, beta, conv_w, *, eps=1e-5):
    """TransitionLayer forward (PyTorch training-mode BN; no running-stats update
    is produced).  x_nchw: (N, C_in, H, W); conv_w: (C_out, C_in, 1, 1)."""
    N, C_in, H, W = x_nchw.shape
    C_out = conv_w.shape[0]
    assert H % 2 == 0 and W % 2 == 0, "AvgPool(2,2) path assumes even spatial dims"
    Ho, Wo = H // 2, W // 2
    c2 = 2 * C_in

    act_dtype = jnp.dtype(x_nchw.dtype)
    half = (jnp.dtype(jnp.bfloat16), jnp.dtype(jnp.float16))
    mm_dtype = jnp.bfloat16 if act_dtype in half else jnp.float32

    # --- BN batch statistics (training mode, biased variance): two-pass for
    #     numerical robustness, f32 accumulation ---
    xf32 = x_nchw.astype(jnp.float32)
    mean = jnp.mean(xf32, axis=(0, 2, 3))
    var = jnp.var(xf32, axis=(0, 2, 3))
    inv_std = gamma.astype(jnp.float32) / jnp.sqrt(var + eps)
    scale = inv_std
    bias = beta.astype(jnp.float32) - mean * inv_std
    # duplicate per-channel params for the two W phases packed into the lane dim
    scale2 = jnp.tile(scale, 2).reshape(1, c2)
    bias2 = jnp.tile(bias, 2).reshape(1, c2)

    # --- NCHW -> NHWC once (native dtype, no upcast); the rest is a free view ---
    # TODO(synk): returning NHWC (or fusing with an NHWC consumer) would remove
    # this repack and the final transpose — the biggest remaining HBM cost
    # around this memory-bound kernel.
    x_nhwc = jnp.transpose(x_nchw, (0, 2, 3, 1))
    xg = x_nhwc.reshape(N * Ho, 2, Wo, c2)

    # Weight: (C_out, C_in, 1, 1) -> (C_in, C_out); stack for the two W phases and
    # fold the 2x2 average-pool 0.25 scale.  Cast to the MXU operand dtype.
    wk = conv_w.reshape(C_out, C_in).T.astype(jnp.float32)
    w2 = (jnp.concatenate([wk, wk], axis=0) * 0.25).astype(mm_dtype)  # (2*C_in, C_out)

    M = N * Ho
    in_isize = act_dtype.itemsize
    mm_isize = jnp.dtype(mm_dtype).itemsize
    # Full per-step working set, per row of a block:
    row_in = 2 * Wo * c2 * in_isize               # native-dtype input slab (x1 DMA buf)
    row_f32 = 3 * Wo * c2 * 4                     # x0/x1 upcasts + yh (f32 temps)
    row_mm = Wo * c2 * mm_isize                   # matmul lhs cast
    row_out = Wo * C_out * (4 + 2 * in_isize)     # f32 matmul result + 2x output buffer
    bytes_per_row = 2 * row_in + row_f32 + row_mm + row_out
    tm = _pick_tile(M, bytes_per_row)

    kernel = functools.partial(_transition_kernel, tm=tm, wo=Wo, c2=c2, c_out=C_out)
    flops = 2 * M * Wo * c2 * C_out
    bytes_accessed = (xg.size * in_isize + (scale2.size + bias2.size) * 4
                      + w2.size * mm_isize + M * Wo * C_out * in_isize)

    out = pl.pallas_call(
        kernel,
        out_shape=jax.ShapeDtypeStruct((M, Wo, C_out), act_dtype),
        grid=(M // tm,),
        in_specs=[
            # TODO(synk): if xprof shows exposed DMA at these small tiles, sweep
            # pipeline_mode=pl.Buffered(3) on this activation spec.
            pl.BlockSpec((tm, 2, Wo, c2), lambda i: (i, 0, 0, 0)),
            pl.BlockSpec((1, c2), lambda i: (0, 0)),
            pl.BlockSpec((1, c2), lambda i: (0, 0)),
            pl.BlockSpec((c2, C_out), lambda i: (0, 0)),
        ],
        out_specs=pl.BlockSpec((tm, Wo, C_out), lambda i: (i, 0, 0)),
        compiler_params=pltpu.CompilerParams(
            dimension_semantics=("parallel",),
            vmem_limit_bytes=32 * 1024 * 1024,
        ),
        cost_estimate=pl.CostEstimate(
            flops=flops, transcendentals=0, bytes_accessed=bytes_accessed),
    )(xg, scale2, bias2, w2)

    # back to NCHW (activation dtype)
    return out.reshape(N, Ho, Wo, C_out).transpose(0, 3, 1, 2)


def _reference(x_nchw, gamma, beta, conv_w, eps=1e-5):
    """Pure-JAX reference matching PyTorch training-mode forward."""
    mean = x_nchw.mean(axis=(0, 2, 3), keepdims=True)
    var = ((x_nchw - mean) ** 2).mean(axis=(0, 2, 3), keepdims=True)
    y = (x_nchw - mean) / jnp.sqrt(var + eps)
    y = y * gamma.reshape(1, -1, 1, 1) + beta.reshape(1, -1, 1, 1)
    y = jnp.maximum(y, 0.0)
    z = jnp.einsum("nchw,oc->nohw", y, conv_w.reshape(conv_w.shape[0], conv_w.shape[1]))
    N, C, H, W = z.shape
    return z.reshape(N, C, H // 2, 2, W // 2, 2).mean(axis=(3, 5))


if __name__ == "__main__":
    key = jax.random.PRNGKey(0)
    k1, k2, k3, k4 = jax.random.split(key, 4)

    N, C_in, H, W = 2, 4, 16, 16
    C_out = C_in // 2  # DenseNet transition halves the channels

    x = jax.random.normal(k1, (N, C_in, H, W), dtype=jnp.float32)
    gamma = 1.0 + 0.1 * jax.random.normal(k2, (C_in,), dtype=jnp.float32)
    beta = 0.1 * jax.random.normal(k3, (C_in,), dtype=jnp.float32)
    conv_w = 0.2 * jax.random.normal(k4, (C_out, C_in, 1, 1), dtype=jnp.float32)

    out = transition_layer(x, gamma, beta, conv_w)
    out = jax.block_until_ready(out)

    ref = _reference(x, gamma, beta, conv_w)
    assert out.shape == (N, C_out, H // 2, W // 2), out.shape
    assert jnp.allclose(out, ref, atol=1e-4, rtol=1e-4), float(jnp.max(jnp.abs(out - ref)))

    print("KERNEL_OK")
</pallas_src>

<mosaic_0001>
module attributes {stable_mosaic.version = 11 : i64} {
  func.func @_transition_kernel(%arg0: i32, %arg1: memref<2x2x8x8xf32, #tpu.memory_space<vmem>>, %arg2: memref<1x8xf32, #tpu.memory_space<vmem>>, %arg3: memref<1x8xf32, #tpu.memory_space<vmem>>, %arg4: memref<8x2xf32, #tpu.memory_space<vmem>>, %arg5: memref<2x8x2xf32, #tpu.memory_space<vmem>>) attributes {dimension_semantics = [#tpu.dimension_semantics<parallel>], iteration_bounds = array<i64: 8>, scalar_prefetch = 0 : i64, scratch_operands = 0 : i64, tpu.core_type = #tpu.core_type<tc>, window_params = [{transform_indices = @transform_0, window_bounds = array<i64: 2, 2, 8, 8>}, {pipeline_mode = #tpu.pipeline_mode<synchronous>, transform_indices = @transform_1, window_bounds = array<i64: 1, 8>}, {pipeline_mode = #tpu.pipeline_mode<synchronous>, transform_indices = @transform_2, window_bounds = array<i64: 1, 8>}, {pipeline_mode = #tpu.pipeline_mode<synchronous>, transform_indices = @transform_3, window_bounds = array<i64: 8, 2>}, {transform_indices = @transform_4, window_bounds = array<i64: 2, 8, 2>}]} {
    %c0 = arith.constant 0 : index
    %c0_0 = arith.constant 0 : index
    %0 = vector.load %arg2[%c0, %c0_0] : memref<1x8xf32, #tpu.memory_space<vmem>>, vector<1x8xf32>
    %c0_1 = arith.constant 0 : index
    %c0_2 = arith.constant 0 : index
    %1 = vector.load %arg3[%c0_1, %c0_2] : memref<1x8xf32, #tpu.memory_space<vmem>>, vector<1x8xf32>
    %c0_3 = arith.constant 0 : index
    %c0_4 = arith.constant 0 : index
    %c0_5 = arith.constant 0 : index
    %c0_6 = arith.constant 0 : index
    %2 = vector.load %arg1[%c0_3, %c0_4, %c0_5, %c0_6] : memref<2x2x8x8xf32, #tpu.memory_space<vmem>>, vector<2x1x8x8xf32>
    %3 = vector.shape_cast %2 : vector<2x1x8x8xf32> to vector<2x8x8xf32>
    %c0_7 = arith.constant 0 : index
    %c1 = arith.constant 1 : index
    %c0_8 = arith.constant 0 : index
    %c0_9 = arith.constant 0 : index
    %4 = vector.load %arg1[%c0_7, %c1, %c0_8, %c0_9] : memref<2x2x8x8xf32, #tpu.memory_space<vmem>>, vector<2x1x8x8xf32>
    %5 = vector.shape_cast %4 : vector<2x1x8x8xf32> to vector<2x8x8xf32>
    %6 = vector.shape_cast %0 : vector<1x8xf32> to vector<1x1x8xf32>
    %7 = vector.broadcast %6 : vector<1x1x8xf32> to vector<2x8x8xf32>
    %8 = arith.mulf %3, %7 : vector<2x8x8xf32>
    %9 = vector.shape_cast %1 : vector<1x8xf32> to vector<1x1x8xf32>
    %10 = vector.broadcast %9 : vector<1x1x8xf32> to vector<2x8x8xf32>
    %11 = arith.addf %8, %10 : vector<2x8x8xf32>
    %cst = arith.constant 0.000000e+00 : f32
    %12 = vector.broadcast %cst : f32 to vector<2x8x8xf32>
    %13 = arith.maximumf %11, %12 : vector<2x8x8xf32>
    %14 = vector.shape_cast %0 : vector<1x8xf32> to vector<1x1x8xf32>
    %15 = vector.broadcast %14 : vector<1x1x8xf32> to vector<2x8x8xf32>
    %16 = arith.mulf %5, %15 : vector<2x8x8xf32>
    %17 = vector.shape_cast %1 : vector<1x8xf32> to vector<1x1x8xf32>
    %18 = vector.broadcast %17 : vector<1x1x8xf32> to vector<2x8x8xf32>
    %19 = arith.addf %16, %18 : vector<2x8x8xf32>
    %cst_10 = arith.constant 0.000000e+00 : f32
    %20 = vector.broadcast %cst_10 : f32 to vector<2x8x8xf32>
    %21 = arith.maximumf %19, %20 : vector<2x8x8xf32>
    %22 = arith.addf %13, %21 : vector<2x8x8xf32>
    %23 = vector.shape_cast %22 : vector<2x8x8xf32> to vector<16x8xf32>
    %c0_11 = arith.constant 0 : index
    %c0_12 = arith.constant 0 : index
    %24 = vector.load %arg4[%c0_11, %c0_12] : memref<8x2xf32, #tpu.memory_space<vmem>>, vector<8x2xf32>
    %cst_13 = arith.constant dense<0.000000e+00> : vector<16x2xf32>
    %25 = tpu.matmul %23, %24, %cst_13 {dimension_numbers = #tpu.dot_dimension_numbers<[1], [0], [0], [1], [0, 0, 1, 1], [], []>} : vector<16x8xf32>, vector<8x2xf32>, vector<16x2xf32> -> vector<16x2xf32>
    %26 = vector.shape_cast %25 : vector<16x2xf32> to vector<2x8x2xf32>
    %c0_14 = arith.constant 0 : index
    %c0_15 = arith.constant 0 : index
    %c0_16 = arith.constant 0 : index
    %27 = vector.load %arg5[%c0_14, %c0_15, %c0_16] : memref<2x8x2xf32, #tpu.memory_space<vmem>>, vector<2x8x2xf32>
    tpu.vector_store %arg5[%c0_14, %c0_15, %c0_16], %26 {strides = array<i32>} : memref<2x8x2xf32, #tpu.memory_space<vmem>>, vector<2x8x2xf32>,
    return
  }
  func.func @transform_0(%arg0: i32) -> (i32, i32, i32, i32) {
    %c0_i32 = arith.constant 0 : i32
    %c0_i32_0 = arith.constant 0 : i32
    %c0_i32_1 = arith.constant 0 : i32
    %c0_i32_2 = arith.constant 0 : i32
    return %arg0, %c0_i32, %c0_i32_0, %c0_i32_1 : i32, i32, i32, i32
  }
  func.func @transform_1(%arg0: i32) -> (i32, i32) {
    %c0_i32 = arith.constant 0 : i32
    %c0_i32_0 = arith.constant 0 : i32
    %c0_i32_1 = arith.constant 0 : i32
    return %c0_i32, %c0_i32_0 : i32, i32
  }
  func.func @transform_2(%arg0: i32) -> (i32, i32) {
    %c0_i32 = arith.constant 0 : i32
    %c0_i32_0 = arith.constant 0 : i32
    %c0_i32_1 = arith.constant 0 : i32
    return %c0_i32, %c0_i32_0 : i32, i32
  }
  func.func @transform_3(%arg0: i32) -> (i32, i32) {
    %c0_i32 = arith.constant 0 : i32
    %c0_i32_0 = arith.constant 0 : i32
    %c0_i32_1 = arith.constant 0 : i32
    return %c0_i32, %c0_i32_0 : i32, i32
  }
  func.func @transform_4(%arg0: i32) -> (i32, i32, i32) {
    %c0_i32 = arith.constant 0 : i32
    %c0_i32_0 = arith.constant 0 : i32
    %c0_i32_1 = arith.constant 0 : i32
    return %arg0, %c0_i32, %c0_i32_0 : i32, i32, i32
  }
}

</mosaic_0001>

<bundles_post_ra>
// kernel: tpu_custom_call.1
= control target key start
LH: loop header
LB: loop body
LE: loop exit
PB: predicated region body
PF: predicated region fallthrough
CT: control target
= control target key end

     0   :  { %s447_s15 = smov 0   ;;  %s473_s0 = inlined_call_operand.vmem [shape: f32[16,2,8,8], index: 0, kind: input, shape index: {}]   ;;  %s474_s1 = inlined_call_operand.vmem [shape: f32[1,8], index: 1, kind: input, shape index: {}]   ;;  %s475_s2 = inlined_call_operand.vmem [shape: f32[1,8], index: 2, kind: input, shape index: {}]   ;;  %s476_s3 = inlined_call_operand.vmem [shape: f32[8,2], index: 3, kind: input, shape index: {}]   ;;  %s477_s4 = inlined_call_operand.vmem [shape: f32[16,8,2], index: 4, kind: output, shape index: {}]  }
   0x1 LB: > { %s379_s16 = sadd.s32 4294967295, %s420_s15   ;;  %p383_p0 = scmp.ge.s32.totalorder %s420_s15, 1  ;;  %s420_s15 = sphi %s447_s15, %s14_s15  }
   0x2   : > { %p164_p1 = scmp.lt.s32.totalorder %s420_s15, 9 }
   0x4   : > { %p165_p2 = pnand %p383_p0, %p164_p1 }
   0x5   : > { %v237_v0 = vld [vmem:[%s476_s3] sm:$0xff] (!%p165_p2)  ;;  %s384_s19 = sshll.u32 (!%p165_p2), %s379_s16, 1  ;;  %vm238_vm0 = vcmask (!%p165_p2), 64512   ;;  %vm320_vm1 = vcmask (!%p165_p2), 15360  }
   0x6   : > { %168 = sbr.rel (%p165_p2) target bundleno = 240 (0xf0), region = 36  ;;  %401 = vmatprep.subr.mxu0 (!%p165_p2), %v237_v0  ;;  %p192_p3 = scmp.lt.s32.totalorder (!%p165_p2), %s384_s19, 15  ;;  %v391_v1 = vld [vmem:[%s474_s1] ss:$0 sm:$0xff] (!%p165_p2) }
   0x7   : > { %402 = vmatpush3.msra.mxu0 (!%p165_p2), %v237_v0  ;;  %v392_v2 = vld [vmem:[%s475_s2] ss:$0 sm:$0xff] (!%p165_p2) }
   0xd   : > { %s479_s19 = smov (!%p192_p3, %s384_s19), 15 }
   0xe   : > { %s397_s20 = sshll.u32 %s479_s19, 4  ;;  %s388_s28 = sshll.u32 %s479_s19, 3 }
   0xf   : > { %s196_s25 = scalar_lea.vmem %s473_s0, %s397_s20  ;;  %s202_s5 = scalar_lea.vmem %s477_s4, %s388_s28 }
  0x10   : > { %v206_v3 = vld [vmem:[%s196_s25] sm:$0xff]  ;;  %v389_v4 = vld [vmem:[%s196_s25 + $0x8] sm:$0xff]  ;;  %v207_v5 = vld [vmem:[%s196_s25 + $0x10] sm:$0xff] }
  0x11   : > { %v217_v6 = vmul.f32 %v391_v1, %v206_v3  ;;  %v229_v7 = vmul.f32 %v391_v1, %v389_v4  ;;  %v390_v8 = vld [vmem:[%s196_s25 + $0x18] sm:$0xff]  ;;  %v218_v9 = vmul.f32 %v391_v1, %v207_v5 }
  0x12   : > { %v230_v10 = vmul.f32 %v391_v1, %v390_v8 }
  0x13   : > { %v225_v11 = vadd.f32 %v392_v2, %v217_v6  ;;  %v231_v12 = vadd.f32 %v392_v2, %v229_v7  ;;  %v226_v13 = vadd.f32 %v392_v2, %v218_v9 }
  0x14   : > { %v232_v14 = vadd.f32 %v392_v2, %v230_v10 }
  0x15   : > { %v227_v15 = vmax.f32 %v225_v11, 0.0  ;;  %v233_v16 = vmax.f32 %v231_v12, 0.0  ;;  %v228_v17 = vmax.f32 %v226_v13, 0.0 }
  0x16   : > { %v234_v18 = vmax.f32 %v232_v14, 0.0 }
  0x17   : > { %v235_v19 = vadd.f32 %v233_v16, %v227_v15 }
  0x18   : > { %v236_v20 = vadd.f32 %v234_v18, %v228_v17 }
  0x19   : > { %403 = vmatprep.mubr.msk.f32.mxu0 %vm238_vm0, %v235_v19 }
  0x1a   : > { %404 = vmatmul.mubr.msk.f32.vlgmr.msra.gmra.mrb[0].mxu0 %vm238_vm0, %v236_v20 }
  0xed   : > { %v405_v21 = vpop.f32.mrb[0].mxu0 }
  0xee   : > { %322 = vst.msk [vmem:[%s202_s5 + $0x8] sm:$0xff] %vm320_vm1, %v405_v21  ;;  %v311_v22 = vpop.f32.mrb[1].mxu0 }
  0xef   : > { %321 = vst.msk [vmem:[%s202_s5] sm:$0xff] %vm320_vm1, %v311_v22 }
  0xf0 PF: > { %s14_s15 = sadd.s32 1, %s420_s15  }
  0xf1   : > { %p11_p4 = scmp.ge.s32.totalorder %s14_s15, 10  }
  0xf3   :  { %13 = sbr.rel (!%p11_p4) target bundleno = 1 (0x1), region = 67 }

</bundles_post_ra>
